<compile_context>
chip_gen: v6e
topology: v6e:2x2x1
jax: 0.10.0
libtpu: 0.0.40
codegen_flags: <defaults>
</compile_context>

<pallas_src>
import functools

import jax
import jax.numpy as jnp
from jax.experimental import pallas as pl
from jax.experimental.pallas import tpu as pltpu


def _round_up(x, m):
    return (x + m - 1) // m * m


def icvae_kernel(
    x_ref, eps_ref,
    w1_ref, b1_ref, w2_ref, b2_ref,
    wmlv_ref, bmlv_ref,
    ws1_ref, bs1_ref, ws2_ref, bs2_ref,
    w6_ref, b6_ref,
    recon_mask_ref, kl_onehot_ref,
    out_ref,
    *, input_dim, latent_dim,
):
    bf16 = jnp.bfloat16
    f32 = jnp.float32
    D, L = input_dim, latent_dim

    # ----- encoder -----
    h = jnp.dot(x_ref[...], w1_ref[...], preferred_element_type=f32) + b1_ref[...]
    h = jnp.maximum(h, 0.0)
    h = jnp.dot(h.astype(bf16), w2_ref[...], preferred_element_type=f32) + b2_ref[...]
    h = jnp.maximum(h, 0.0)

    # fused mu|logvar projection, pre-shifted into the output-slab layout:
    # cols [D, D+L) = mu, cols [D+L, D+2L) = logvar, every other col exactly 0.
    ml = jnp.dot(h.astype(bf16), wmlv_ref[...], preferred_element_type=f32) + bmlv_ref[...]
    mu = ml[:, D:D + L]
    logvar = ml[:, D + L:D + 2 * L]

    # ----- reparameterize (f32) -----
    z = mu + eps_ref[...] * jnp.exp(0.5 * logvar)

    # ----- fused decoder stage-1 + aux stage-1 -----
    # [z | mu] (tb, 2L) @ blockdiag(w4, wa1) -> [d(64) | a(32) | 0] (tb, 128)
    zm = jnp.concatenate([z, mu], axis=1).astype(bf16)
    h1 = jnp.dot(zm, ws1_ref[...], preferred_element_type=f32) + bs1_ref[...]
    h1 = jnp.maximum(h1, 0.0)

    # ----- fused decoder stage-2 + aux stage-2 -----
    # [d | a | 0] (tb, 128) @ blockdiag(w5, wa2) -> [dec(128) | aux(1) | 0] (tb, 256)
    h2 = jnp.dot(h1.astype(bf16), ws2_ref[...], preferred_element_type=f32) + bs2_ref[...]
    d = jnp.maximum(h2[:, :128], 0.0)
    sig_a = jax.nn.sigmoid(h2[:, 128:129])      # (tb, 1); aux output has no ReLU

    # ----- decoder output projection (w6 zero-padded: cols >= D give 0 logits) -----
    logits = jnp.dot(d.astype(bf16), w6_ref[...], preferred_element_type=f32) + b6_ref[...]

    # single lane-dense slab: recon | mu | logvar | sigmoid(aux) | 0-pad
    out_ref[...] = (jax.nn.sigmoid(logits) * recon_mask_ref[...]
                    + ml
                    + sig_a * kl_onehot_ref[...])


def _linear_params(key, fan_in, fan_out):
    """Deterministic PyTorch-style init: U(-1/sqrt(fan_in), 1/sqrt(fan_in))."""
    kw, kb = jax.random.split(key)
    bound = 1.0 / jnp.sqrt(float(fan_in))
    w = jax.random.uniform(kw, (fan_in, fan_out), jnp.float32, -bound, bound)
    b = jax.random.uniform(kb, (1, fan_out), jnp.float32, -bound, bound)
    return w, b


def make_icvae_params(key, input_dim, latent_dim):
    keys = jax.random.split(key, 9)
    p = {}
    p["w1"], p["b1"] = _linear_params(keys[0], input_dim, 128)
    p["w2"], p["b2"] = _linear_params(keys[1], 128, 64)
    p["wmu"], p["bmu"] = _linear_params(keys[2], 64, latent_dim)
    p["wlv"], p["blv"] = _linear_params(keys[3], 64, latent_dim)
    p["wa1"], p["ba1"] = _linear_params(keys[4], latent_dim, 32)
    p["wa2"], p["ba2"] = _linear_params(keys[5], 32, 1)
    p["w4"], p["b4"] = _linear_params(keys[6], latent_dim, 64)
    p["w5"], p["b5"] = _linear_params(keys[7], 64, 128)
    p["w6"], p["b6"] = _linear_params(keys[8], 128, input_dim)
    return p


def icvae_forward(x, eps, params, *, tb=None):
    B, D = x.shape
    L = params["wmu"].shape[1]
    OW = _round_up(D + 2 * L + 1, 128)     # packed output slab width

    f32 = jnp.float32
    bf16 = jnp.bfloat16

    # ---- batch tile: multiple of 16 (bf16 x), capped at 1024 ----
    if tb is None:
        tb = min(1024, _round_up(B, 16))
        # Prefer >= 2 grid steps so the "parallel" batch axis can be split
        # across both v7x TensorCores once tiles are reasonably large.
        if B >= 512 and _round_up(B, 16) <= tb:
            tb = _round_up(pl.cdiv(B, 2), 16)
    tb = max(16, _round_up(tb, 16))
    Bp = _round_up(B, tb)
    num_tiles = Bp // tb

    # zero-pad the batch; padded rows are sliced off below (before the kl mean).
    if Bp != B:
        x = jnp.pad(x, ((0, Bp - B), (0, 0)))
        eps = jnp.pad(eps, ((0, Bp - B), (0, 0)))

    # ---- kernel-layout weights (bf16 operands, f32 biases) ----
    # mu|logvar projection pre-shifted to output cols [D, D+2L)
    wmlv = jnp.zeros((64, OW), f32)
    wmlv = wmlv.at[:, D:D + L].set(params["wmu"])
    wmlv = wmlv.at[:, D + L:D + 2 * L].set(params["wlv"])
    bmlv = jnp.zeros((1, OW), f32)
    bmlv = bmlv.at[:, D:D + L].set(params["bmu"])
    bmlv = bmlv.at[:, D + L:D + 2 * L].set(params["blv"])

    # stage 1: [z | mu] (2L) -> [d(64) | a(32) | 0] (128)
    ws1 = jnp.zeros((2 * L, 128), f32)
    ws1 = ws1.at[:L, :64].set(params["w4"])
    ws1 = ws1.at[L:, 64:96].set(params["wa1"])
    bs1 = jnp.zeros((1, 128), f32)
    bs1 = bs1.at[:, :64].set(params["b4"])
    bs1 = bs1.at[:, 64:96].set(params["ba1"])

    # stage 2: [d | a | 0] (128) -> [decoder-h(128) | aux-out(1) | 0] (256)
    ws2 = jnp.zeros((128, 256), f32)
    ws2 = ws2.at[:64, :128].set(params["w5"])
    ws2 = ws2.at[64:96, 128:129].set(params["wa2"])
    bs2 = jnp.zeros((1, 256), f32)
    bs2 = bs2.at[:, :128].set(params["b5"])
    bs2 = bs2.at[:, 128:129].set(params["ba2"])

    # final decoder projection into output cols [0, D)
    w6p = jnp.zeros((128, OW), f32).at[:, :D].set(params["w6"])
    b6p = jnp.zeros((1, OW), f32).at[:, :D].set(params["b6"])

    recon_mask = jnp.zeros((1, OW), f32).at[:, :D].set(1.0)
    kl_onehot = jnp.zeros((1, OW), f32).at[0, D + 2 * L].set(1.0)

    inputs = (
        x.astype(bf16), eps.astype(f32),
        params["w1"].astype(bf16), params["b1"].astype(f32),
        params["w2"].astype(bf16), params["b2"].astype(f32),
        wmlv.astype(bf16), bmlv,
        ws1.astype(bf16), bs1,
        ws2.astype(bf16), bs2,
        w6p.astype(bf16), b6p,
        recon_mask, kl_onehot,
    )

    def batch_spec(width):
        return pl.BlockSpec((tb, width), lambda i: (i, 0))

    def resident_spec(arr):
        shape = arr.shape
        return pl.BlockSpec(shape, lambda i, _s=shape: (0,) * len(_s))

    in_specs = [batch_spec(D), batch_spec(L)] + [resident_spec(a) for a in inputs[2:]]

    weight_bytes = sum(int(a.size) * a.dtype.itemsize for a in inputs[2:])
    flops = 2 * Bp * (D * 128 + 128 * 64 + 64 * OW
                      + 2 * L * 128 + 128 * 256 + 128 * OW)
    transcendentals = Bp * (L + OW + 1)
    bytes_accessed = Bp * (2 * D + 4 * L + 4 * OW) + weight_bytes

    out = pl.pallas_call(
        functools.partial(icvae_kernel, input_dim=D, latent_dim=L),
        out_shape=jax.ShapeDtypeStruct((Bp, OW), f32),
        grid=(num_tiles,),
        in_specs=in_specs,
        out_specs=batch_spec(OW),
        compiler_params=pltpu.CompilerParams(
            dimension_semantics=("parallel",),
            vmem_limit_bytes=32 * 1024 * 1024),
        cost_estimate=pl.CostEstimate(
            flops=flops,
            transcendentals=transcendentals,
            bytes_accessed=bytes_accessed),
    )(*inputs)

    recon = out[:B, :D]
    mu = out[:B, D:D + L]
    logvar = out[:B, D + L:D + 2 * L]
    kl_w = jnp.mean(out[:B, D + 2 * L])
    return recon, mu, logvar, kl_w


def icvae_forward_ref(x, eps, params):
    """Pure-JAX reference mirroring the kernel's bf16-operand / f32-accum math."""
    bf16 = jnp.bfloat16

    def dot(a, w):
        return jnp.dot(a.astype(bf16), w.astype(bf16),
                       preferred_element_type=jnp.float32)

    h = jnp.maximum(dot(x, params["w1"]) + params["b1"], 0.0)
    h = jnp.maximum(dot(h, params["w2"]) + params["b2"], 0.0)
    mu = dot(h, params["wmu"]) + params["bmu"]
    logvar = dot(h, params["wlv"]) + params["blv"]
    z = mu + eps * jnp.exp(0.5 * logvar)
    d = jnp.maximum(dot(z, params["w4"]) + params["b4"], 0.0)
    d = jnp.maximum(dot(d, params["w5"]) + params["b5"], 0.0)
    recon = jax.nn.sigmoid(dot(d, params["w6"]) + params["b6"])
    a = jnp.maximum(dot(mu, params["wa1"]) + params["ba1"], 0.0)
    a = dot(a, params["wa2"]) + params["ba2"]
    kl_w = jnp.mean(jax.nn.sigmoid(a))
    return recon, mu, logvar, kl_w


if __name__ == "__main__":
    key = jax.random.PRNGKey(0)
    k_param, k_x, k_eps = jax.random.split(key, 3)

    B, INPUT_DIM, LATENT_DIM = 8, 32, 16

    params = make_icvae_params(k_param, INPUT_DIM, LATENT_DIM)
    # x in [0, 1] (the module's loss uses BCE against x, so inputs are probabilities)
    x = jax.random.uniform(k_x, (B, INPUT_DIM), jnp.float32)
    eps = jax.random.normal(k_eps, (B, LATENT_DIM), jnp.float32)

    recon, mu, logvar, kl_w = jax.jit(icvae_forward)(x, eps, params)
    jax.block_until_ready((recon, mu, logvar, kl_w))

    # sanity check against pure-JAX reference (same bf16/f32 mixed precision)
    r_ref, mu_ref, lv_ref, kw_ref = icvae_forward_ref(x, eps, params)
    assert recon.shape == (B, INPUT_DIM)
    assert mu.shape == (B, LATENT_DIM) and logvar.shape == (B, LATENT_DIM)
    assert jnp.allclose(recon, r_ref, atol=5e-3)
    assert jnp.allclose(mu, mu_ref, atol=5e-3)
    assert jnp.allclose(logvar, lv_ref, atol=5e-3)
    assert jnp.allclose(kl_w, kw_ref, atol=5e-3)

    print("KERNEL_OK")
</pallas_src>

<mosaic_0001>
module attributes {stable_mosaic.version = 11 : i64} {
  func.func @icvae_kernel(%arg0: i32, %arg1: memref<16x32xbf16, #tpu.memory_space<vmem>>, %arg2: memref<16x16xf32, #tpu.memory_space<vmem>>, %arg3: memref<32x128xbf16, #tpu.memory_space<vmem>>, %arg4: memref<1x128xf32, #tpu.memory_space<vmem>>, %arg5: memref<128x64xbf16, #tpu.memory_space<vmem>>, %arg6: memref<1x64xf32, #tpu.memory_space<vmem>>, %arg7: memref<64x128xbf16, #tpu.memory_space<vmem>>, %arg8: memref<1x128xf32, #tpu.memory_space<vmem>>, %arg9: memref<32x128xbf16, #tpu.memory_space<vmem>>, %arg10: memref<1x128xf32, #tpu.memory_space<vmem>>, %arg11: memref<128x256xbf16, #tpu.memory_space<vmem>>, %arg12: memref<1x256xf32, #tpu.memory_space<vmem>>, %arg13: memref<128x128xbf16, #tpu.memory_space<vmem>>, %arg14: memref<1x128xf32, #tpu.memory_space<vmem>>, %arg15: memref<1x128xf32, #tpu.memory_space<vmem>>, %arg16: memref<1x128xf32, #tpu.memory_space<vmem>>, %arg17: memref<16x128xf32, #tpu.memory_space<vmem>>) attributes {dimension_semantics = [#tpu.dimension_semantics<parallel>], iteration_bounds = array<i64: 1>, scalar_prefetch = 0 : i64, scratch_operands = 0 : i64, tpu.core_type = #tpu.core_type<tc>, window_params = [{transform_indices = @transform_0, window_bounds = array<i64: 16, 32>}, {transform_indices = @transform_1, window_bounds = array<i64: 16, 16>}, {pipeline_mode = #tpu.pipeline_mode<synchronous>, transform_indices = @transform_2, window_bounds = array<i64: 32, 128>}, {pipeline_mode = #tpu.pipeline_mode<synchronous>, transform_indices = @transform_3, window_bounds = array<i64: 1, 128>}, {pipeline_mode = #tpu.pipeline_mode<synchronous>, transform_indices = @transform_4, window_bounds = array<i64: 128, 64>}, {pipeline_mode = #tpu.pipeline_mode<synchronous>, transform_indices = @transform_5, window_bounds = array<i64: 1, 64>}, {pipeline_mode = #tpu.pipeline_mode<synchronous>, transform_indices = @transform_6, window_bounds = array<i64: 64, 128>}, {pipeline_mode = #tpu.pipeline_mode<synchronous>, transform_indices = @transform_7, window_bounds = array<i64: 1, 128>}, {pipeline_mode = #tpu.pipeline_mode<synchronous>, transform_indices = @transform_8, window_bounds = array<i64: 32, 128>}, {pipeline_mode = #tpu.pipeline_mode<synchronous>, transform_indices = @transform_9, window_bounds = array<i64: 1, 128>}, {pipeline_mode = #tpu.pipeline_mode<synchronous>, transform_indices = @transform_10, window_bounds = array<i64: 128, 256>}, {pipeline_mode = #tpu.pipeline_mode<synchronous>, transform_indices = @transform_11, window_bounds = array<i64: 1, 256>}, {pipeline_mode = #tpu.pipeline_mode<synchronous>, transform_indices = @transform_12, window_bounds = array<i64: 128, 128>}, {pipeline_mode = #tpu.pipeline_mode<synchronous>, transform_indices = @transform_13, window_bounds = array<i64: 1, 128>}, {pipeline_mode = #tpu.pipeline_mode<synchronous>, transform_indices = @transform_14, window_bounds = array<i64: 1, 128>}, {pipeline_mode = #tpu.pipeline_mode<synchronous>, transform_indices = @transform_15, window_bounds = array<i64: 1, 128>}, {transform_indices = @transform_16, window_bounds = array<i64: 16, 128>}]} {
    %c0 = arith.constant 0 : index
    %c0_0 = arith.constant 0 : index
    %0 = vector.load %arg1[%c0, %c0_0] : memref<16x32xbf16, #tpu.memory_space<vmem>>, vector<16x32xbf16>
    %c0_1 = arith.constant 0 : index
    %c0_2 = arith.constant 0 : index
    %1 = vector.load %arg3[%c0_1, %c0_2] : memref<32x128xbf16, #tpu.memory_space<vmem>>, vector<32x128xbf16>
    %cst = arith.constant dense<0.000000e+00> : vector<16x128xf32>
    %2 = tpu.matmul %0, %1, %cst {dimension_numbers = #tpu.dot_dimension_numbers<[1], [0], [0], [1], [0, 0, 1, 1], [], []>} : vector<16x32xbf16>, vector<32x128xbf16>, vector<16x128xf32> -> vector<16x128xf32>
    %c0_3 = arith.constant 0 : index
    %c0_4 = arith.constant 0 : index
    %3 = vector.load %arg4[%c0_3, %c0_4] : memref<1x128xf32, #tpu.memory_space<vmem>>, vector<1x128xf32>
    %4 = vector.broadcast %3 : vector<1x128xf32> to vector<16x128xf32>
    %5 = arith.addf %2, %4 : vector<16x128xf32>
    %cst_5 = arith.constant 0.000000e+00 : f32
    %6 = vector.broadcast %cst_5 : f32 to vector<16x128xf32>
    %7 = arith.maximumf %5, %6 : vector<16x128xf32>
    %8 = arith.truncf %7 : vector<16x128xf32> to vector<16x128xbf16>
    %c0_6 = arith.constant 0 : index
    %c0_7 = arith.constant 0 : index
    %9 = vector.load %arg5[%c0_6, %c0_7] : memref<128x64xbf16, #tpu.memory_space<vmem>>, vector<128x64xbf16>
    %cst_8 = arith.constant dense<0.000000e+00> : vector<16x64xf32>
    %10 = tpu.matmul %8, %9, %cst_8 {dimension_numbers = #tpu.dot_dimension_numbers<[1], [0], [0], [1], [0, 0, 1, 1], [], []>} : vector<16x128xbf16>, vector<128x64xbf16>, vector<16x64xf32> -> vector<16x64xf32>
    %c0_9 = arith.constant 0 : index
    %c0_10 = arith.constant 0 : index
    %11 = vector.load %arg6[%c0_9, %c0_10] : memref<1x64xf32, #tpu.memory_space<vmem>>, vector<1x64xf32>
    %12 = vector.broadcast %11 : vector<1x64xf32> to vector<16x64xf32>
    %13 = arith.addf %10, %12 : vector<16x64xf32>
    %cst_11 = arith.constant 0.000000e+00 : f32
    %14 = vector.broadcast %cst_11 : f32 to vector<16x64xf32>
    %15 = arith.maximumf %13, %14 : vector<16x64xf32>
    %16 = arith.truncf %15 : vector<16x64xf32> to vector<16x64xbf16>
    %c0_12 = arith.constant 0 : index
    %c0_13 = arith.constant 0 : index
    %17 = vector.load %arg7[%c0_12, %c0_13] : memref<64x128xbf16, #tpu.memory_space<vmem>>, vector<64x128xbf16>
    %cst_14 = arith.constant dense<0.000000e+00> : vector<16x128xf32>
    %18 = tpu.matmul %16, %17, %cst_14 {dimension_numbers = #tpu.dot_dimension_numbers<[1], [0], [0], [1], [0, 0, 1, 1], [], []>} : vector<16x64xbf16>, vector<64x128xbf16>, vector<16x128xf32> -> vector<16x128xf32>
    %c0_15 = arith.constant 0 : index
    %c0_16 = arith.constant 0 : index
    %19 = vector.load %arg8[%c0_15, %c0_16] : memref<1x128xf32, #tpu.memory_space<vmem>>, vector<1x128xf32>
    %20 = vector.broadcast %19 : vector<1x128xf32> to vector<16x128xf32>
    %21 = arith.addf %18, %20 : vector<16x128xf32>
    %22 = vector.extract_strided_slice %21 {offsets = [0, 32], sizes = [16, 16], strides = [1, 1]} : vector<16x128xf32> to vector<16x16xf32>
    %23 = vector.extract_strided_slice %21 {offsets = [0, 48], sizes = [16, 16], strides = [1, 1]} : vector<16x128xf32> to vector<16x16xf32>
    %c0_17 = arith.constant 0 : index
    %c0_18 = arith.constant 0 : index
    %24 = vector.load %arg2[%c0_17, %c0_18] : memref<16x16xf32, #tpu.memory_space<vmem>>, vector<16x16xf32>
    %cst_19 = arith.constant 5.000000e-01 : f32
    %25 = vector.broadcast %cst_19 : f32 to vector<16x16xf32>
    %26 = arith.mulf %25, %23 : vector<16x16xf32>
    %27 = math.exp %26 : vector<16x16xf32>
    %28 = arith.mulf %24, %27 : vector<16x16xf32>
    %29 = arith.addf %22, %28 : vector<16x16xf32>
    %30 = tpu.concatenate %29, %22 in 1 : vector<16x16xf32>, vector<16x16xf32> -> vector<16x32xf32>
    %31 = arith.truncf %30 : vector<16x32xf32> to vector<16x32xbf16>
    %c0_20 = arith.constant 0 : index
    %c0_21 = arith.constant 0 : index
    %32 = vector.load %arg9[%c0_20, %c0_21] : memref<32x128xbf16, #tpu.memory_space<vmem>>, vector<32x128xbf16>
    %cst_22 = arith.constant dense<0.000000e+00> : vector<16x128xf32>
    %33 = tpu.matmul %31, %32, %cst_22 {dimension_numbers = #tpu.dot_dimension_numbers<[1], [0], [0], [1], [0, 0, 1, 1], [], []>} : vector<16x32xbf16>, vector<32x128xbf16>, vector<16x128xf32> -> vector<16x128xf32>
    %c0_23 = arith.constant 0 : index
    %c0_24 = arith.constant 0 : index
    %34 = vector.load %arg10[%c0_23, %c0_24] : memref<1x128xf32, #tpu.memory_space<vmem>>, vector<1x128xf32>
    %35 = vector.broadcast %34 : vector<1x128xf32> to vector<16x128xf32>
    %36 = arith.addf %33, %35 : vector<16x128xf32>
    %cst_25 = arith.constant 0.000000e+00 : f32
    %37 = vector.broadcast %cst_25 : f32 to vector<16x128xf32>
    %38 = arith.maximumf %36, %37 : vector<16x128xf32>
    %39 = arith.truncf %38 : vector<16x128xf32> to vector<16x128xbf16>
    %c0_26 = arith.constant 0 : index
    %c0_27 = arith.constant 0 : index
    %40 = vector.load %arg11[%c0_26, %c0_27] : memref<128x256xbf16, #tpu.memory_space<vmem>>, vector<128x256xbf16>
    %cst_28 = arith.constant dense<0.000000e+00> : vector<16x256xf32>
    %41 = tpu.matmul %39, %40, %cst_28 {dimension_numbers = #tpu.dot_dimension_numbers<[1], [0], [0], [1], [0, 0, 1, 1], [], []>} : vector<16x128xbf16>, vector<128x256xbf16>, vector<16x256xf32> -> vector<16x256xf32>
    %c0_29 = arith.constant 0 : index
    %c0_30 = arith.constant 0 : index
    %42 = vector.load %arg12[%c0_29, %c0_30] : memref<1x256xf32, #tpu.memory_space<vmem>>, vector<1x256xf32>
    %43 = vector.broadcast %42 : vector<1x256xf32> to vector<16x256xf32>
    %44 = arith.addf %41, %43 : vector<16x256xf32>
    %45 = vector.extract_strided_slice %44 {offsets = [0, 0], sizes = [16, 128], strides = [1, 1]} : vector<16x256xf32> to vector<16x128xf32>
    %cst_31 = arith.constant 0.000000e+00 : f32
    %46 = vector.broadcast %cst_31 : f32 to vector<16x128xf32>
    %47 = arith.maximumf %45, %46 : vector<16x128xf32>
    %48 = vector.extract_strided_slice %44 {offsets = [0, 128], sizes = [16, 1], strides = [1, 1]} : vector<16x256xf32> to vector<16x1xf32>
    %49 = arith.negf %48 : vector<16x1xf32>
    %50 = math.exp %49 : vector<16x1xf32>
    %cst_32 = arith.constant 1.000000e+00 : f32
    %51 = vector.broadcast %cst_32 : f32 to vector<16x1xf32>
    %52 = arith.addf %51, %50 : vector<16x1xf32>
    %53 = arith.divf %51, %52 : vector<16x1xf32>
    %54 = arith.truncf %47 : vector<16x128xf32> to vector<16x128xbf16>
    %c0_33 = arith.constant 0 : index
    %c0_34 = arith.constant 0 : index
    %55 = vector.load %arg13[%c0_33, %c0_34] : memref<128x128xbf16, #tpu.memory_space<vmem>>, vector<128x128xbf16>
    %cst_35 = arith.constant dense<0.000000e+00> : vector<16x128xf32>
    %56 = tpu.matmul %54, %55, %cst_35 {dimension_numbers = #tpu.dot_dimension_numbers<[1], [0], [0], [1], [0, 0, 1, 1], [], []>} : vector<16x128xbf16>, vector<128x128xbf16>, vector<16x128xf32> -> vector<16x128xf32>
    %c0_36 = arith.constant 0 : index
    %c0_37 = arith.constant 0 : index
    %57 = vector.load %arg14[%c0_36, %c0_37] : memref<1x128xf32, #tpu.memory_space<vmem>>, vector<1x128xf32>
    %58 = vector.broadcast %57 : vector<1x128xf32> to vector<16x128xf32>
    %59 = arith.addf %56, %58 : vector<16x128xf32>
    %60 = arith.negf %59 : vector<16x128xf32>
    %61 = math.exp %60 : vector<16x128xf32>
    %cst_38 = arith.constant 1.000000e+00 : f32
    %62 = vector.broadcast %cst_38 : f32 to vector<16x128xf32>
    %63 = arith.addf %62, %61 : vector<16x128xf32>
    %64 = arith.divf %62, %63 : vector<16x128xf32>
    %c0_39 = arith.constant 0 : index
    %c0_40 = arith.constant 0 : index
    %65 = vector.load %arg15[%c0_39, %c0_40] : memref<1x128xf32, #tpu.memory_space<vmem>>, vector<1x128xf32>
    %66 = vector.broadcast %65 : vector<1x128xf32> to vector<16x128xf32>
    %67 = arith.mulf %64, %66 : vector<16x128xf32>
    %68 = arith.addf %67, %21 : vector<16x128xf32>
    %c0_41 = arith.constant 0 : index
    %c0_42 = arith.constant 0 : index
    %69 = vector.load %arg16[%c0_41, %c0_42] : memref<1x128xf32, #tpu.memory_space<vmem>>, vector<1x128xf32>
    %70 = vector.broadcast %53 : vector<16x1xf32> to vector<16x128xf32>
    %71 = vector.broadcast %69 : vector<1x128xf32> to vector<16x128xf32>
    %72 = arith.mulf %70, %71 : vector<16x128xf32>
    %73 = arith.addf %68, %72 : vector<16x128xf32>
    %c0_43 = arith.constant 0 : index
    %c0_44 = arith.constant 0 : index
    %74 = vector.load %arg17[%c0_43, %c0_44] : memref<16x128xf32, #tpu.memory_space<vmem>>, vector<16x128xf32>
    tpu.vector_store %arg17[%c0_43, %c0_44], %73 {strides = array<i32>} : memref<16x128xf32, #tpu.memory_space<vmem>>, vector<16x128xf32>,
    return
  }
  func.func @transform_0(%arg0: i32) -> (i32, i32) {
    %c0_i32 = arith.constant 0 : i32
    %c0_i32_0 = arith.constant 0 : i32
    return %arg0, %c0_i32 : i32, i32
  }
  func.func @transform_1(%arg0: i32) -> (i32, i32) {
    %c0_i32 = arith.constant 0 : i32
    %c0_i32_0 = arith.constant 0 : i32
    return %arg0, %c0_i32 : i32, i32
  }
  func.func @transform_2(%arg0: i32) -> (i32, i32) {
    %c0_i32 = arith.constant 0 : i32
    %c0_i32_0 = arith.constant 0 : i32
    %c0_i32_1 = arith.constant 0 : i32
    return %c0_i32, %c0_i32_0 : i32, i32
  }
  func.func @transform_3(%arg0: i32) -> (i32, i32) {
    %c0_i32 = arith.constant 0 : i32
    %c0_i32_0 = arith.constant 0 : i32
    %c0_i32_1 = arith.constant 0 : i32
    return %c0_i32, %c0_i32_0 : i32, i32
  }
  func.func @transform_4(%arg0: i32) -> (i32, i32) {
    %c0_i32 = arith.constant 0 : i32
    %c0_i32_0 = arith.constant 0 : i32
    %c0_i32_1 = arith.constant 0 : i32
    return %c0_i32, %c0_i32_0 : i32, i32
  }
  func.func @transform_5(%arg0: i32) -> (i32, i32) {
    %c0_i32 = arith.constant 0 : i32
    %c0_i32_0 = arith.constant 0 : i32
    %c0_i32_1 = arith.constant 0 : i32
    return %c0_i32, %c0_i32_0 : i32, i32
  }
  func.func @transform_6(%arg0: i32) -> (i32, i32) {
    %c0_i32 = arith.constant 0 : i32
    %c0_i32_0 = arith.constant 0 : i32
    %c0_i32_1 = arith.constant 0 : i32
    return %c0_i32, %c0_i32_0 : i32, i32
  }
  func.func @transform_7(%arg0: i32) -> (i32, i32) {
    %c0_i32 = arith.constant 0 : i32
    %c0_i32_0 = arith.constant 0 : i32
    %c0_i32_1 = arith.constant 0 : i32
    return %c0_i32, %c0_i32_0 : i32, i32
  }
  func.func @transform_8(%arg0: i32) -> (i32, i32) {
    %c0_i32 = arith.constant 0 : i32
    %c0_i32_0 = arith.constant 0 : i32
    %c0_i32_1 = arith.constant 0 : i32
    return %c0_i32, %c0_i32_0 : i32, i32
  }
  func.func @transform_9(%arg0: i32) -> (i32, i32) {
    %c0_i32 = arith.constant 0 : i32
    %c0_i32_0 = arith.constant 0 : i32
    %c0_i32_1 = arith.constant 0 : i32
    return %c0_i32, %c0_i32_0 : i32, i32
  }
  func.func @transform_10(%arg0: i32) -> (i32, i32) {
    %c0_i32 = arith.constant 0 : i32
    %c0_i32_0 = arith.constant 0 : i32
    %c0_i32_1 = arith.constant 0 : i32
    return %c0_i32, %c0_i32_0 : i32, i32
  }
  func.func @transform_11(%arg0: i32) -> (i32, i32) {
    %c0_i32 = arith.constant 0 : i32
    %c0_i32_0 = arith.constant 0 : i32
    %c0_i32_1 = arith.constant 0 : i32
    return %c0_i32, %c0_i32_0 : i32, i32
  }
  func.func @transform_12(%arg0: i32) -> (i32, i32) {
    %c0_i32 = arith.constant 0 : i32
    %c0_i32_0 = arith.constant 0 : i32
    %c0_i32_1 = arith.constant 0 : i32
    return %c0_i32, %c0_i32_0 : i32, i32
  }
  func.func @transform_13(%arg0: i32) -> (i32, i32) {
    %c0_i32 = arith.constant 0 : i32
    %c0_i32_0 = arith.constant 0 : i32
    %c0_i32_1 = arith.constant 0 : i32
    return %c0_i32, %c0_i32_0 : i32, i32
  }
  func.func @transform_14(%arg0: i32) -> (i32, i32) {
    %c0_i32 = arith.constant 0 : i32
    %c0_i32_0 = arith.constant 0 : i32
    %c0_i32_1 = arith.constant 0 : i32
    return %c0_i32, %c0_i32_0 : i32, i32
  }
  func.func @transform_15(%arg0: i32) -> (i32, i32) {
    %c0_i32 = arith.constant 0 : i32
    %c0_i32_0 = arith.constant 0 : i32
    %c0_i32_1 = arith.constant 0 : i32
    return %c0_i32, %c0_i32_0 : i32, i32
  }
  func.func @transform_16(%arg0: i32) -> (i32, i32) {
    %c0_i32 = arith.constant 0 : i32
    %c0_i32_0 = arith.constant 0 : i32
    return %arg0, %c0_i32 : i32, i32
  }
}

</mosaic_0001>

<bundles_post_ra>
// kernel: icvae_forward.1
= control target key start
LH: loop header
LB: loop body
LE: loop exit
PB: predicated region body
PF: predicated region fallthrough
CT: control target
= control target key end

     0   :  { %v1017_v0 = vmov 0.0   ;;  %vm1018_vm0 = vmmov 0   ;;  %vm84_vm1 = vcmask 261120   ;;  %vm286_vm2 = vcmask 523264   ;;  %s1020_s28 = smov 32   ;;  %s1021_s29 = smov 112   ;;  %s1316_s2 = inlined_call_operand.vmem [shape: bf16[32,128], index: 2, kind: input, shape index: {}]   ;;  %s1317_s4 = inlined_call_operand.vmem [shape: bf16[128,64], index: 4, kind: input, shape index: {}]   ;;  %s1318_s0 = inlined_call_operand.vmem [shape: bf16[16,32], index: 0, kind: input, shape index: {}]   ;;  %s1319_s6 = inlined_call_operand.vmem [shape: bf16[64,128], index: 6, kind: input, shape index: {}]   ;;  %s1320_s3 = inlined_call_operand.vmem [shape: f32[1,128], index: 3, kind: input, shape index: {}]   ;;  %s1321_s5 = inlined_call_operand.vmem [shape: f32[1,64], index: 5, kind: input, shape index: {}]   ;;  %s1322_s7 = inlined_call_operand.vmem [shape: f32[1,128], index: 7, kind: input, shape index: {}]   ;;  %s1323_s1 = inlined_call_operand.vmem [shape: f32[16,16], index: 1, kind: input, shape index: {}]   ;;  %s1324_s8 = inlined_call_operand.vmem [shape: bf16[32,128], index: 8, kind: input, shape index: {}]   ;;  %s1325_s10 = inlined_call_operand.vmem [shape: bf16[128,256], index: 10, kind: input, shape index: {}]   ;;  %s1326_s12 = inlined_call_operand.vmem [shape: bf16[128,128], index: 12, kind: input, shape index: {}]   ;;  %s1327_s9 = inlined_call_operand.vmem [shape: f32[1,128], index: 9, kind: input, shape index: {}]   ;;  %s1328_s11 = inlined_call_operand.vmem [shape: f32[1,256], index: 11, kind: input, shape index: {}]   ;;  %s1329_s13 = inlined_call_operand.vmem [shape: f32[1,128], index: 13, kind: input, shape index: {}]   ;;  %s1330_s14 = inlined_call_operand.vmem [shape: f32[1,128], index: 14, kind: input, shape index: {}]   ;;  %s1331_s15 = inlined_call_operand.vmem [shape: f32[1,128], index: 15, kind: input, shape index: {}]   ;;  %s1332_s16 = inlined_call_operand.vmem [shape: f32[16,128], index: 16, kind: output, shape index: {}]  }
   0x1   :  { %1334 = sst [smem:[#allocation2_spill]] %s1316_s2  ;;  %861 = vmatprep.subr.bf16.mxu0 %v1017_v0  ;;  %865 = vmatprep.mubr.msk.bf16.mxu0 %vm1018_vm0, %v1017_v0  ;;  %v951_v3 = vld [vmem:[%s1317_s4 + $0x38] sm:$0xff]   ;;  %v950_v4 = vld [vmem:[%s1318_s0] sm:$0xff]   ;;  %v952_v5 = vld [vmem:[%s1317_s4 + $0x30] sm:$0xff]   ;;  %s1022_s17 = smov 96   ;;  %vm375_vm3 = vcmask 130048  }
   0x2   :  { %s1335_s23 = sld [smem:[#allocation2_spill]]  ;;  %869 = vmatprep.subr.bf16.mxu1 %v1017_v0  ;;  %885 = vmatprep.mubr.msk.bf16.mxu1 %vm1018_vm0, %v1017_v0  ;;  %v953_v6 = vld [vmem:[%s1317_s4 + $0x28] sm:$0xff]   ;;  %v954_v7 = vld [vmem:[%s1317_s4 + $0x20] sm:$0xff]   ;;  %v955_v8 = vld [vmem:[%s1317_s4 + $0x18] sm:$0xff]  }
   0x3   :  { %870 = vmatpush3.bf16.msra.mxu1 %v951_v3  ;;  %v956_v9 = vld [vmem:[%s1317_s4 + $0x10] sm:$0xff]   ;;  %v957_v10 = vld [vmem:[%s1317_s4 + $0x8] sm:$0xff]   ;;  %v958_v11 = vld [vmem:[%s1317_s4] sm:$0xff]  }
   0x4   :  { %871 = vmatprep.subr.bf16.mxu1 %v1017_v0  ;;  %v959_v12 = vld [vmem:[%s1319_s6 + $0x18] sm:$0xff]   ;;  %v777_v13 = vld [vmem:[%s1320_s3] ss:$0 sm:$0xff]  ;;  %v960_v23 = vld [vmem:[%s1319_s6 + $0x10] sm:$0xff]  }
   0x5   :  { %v961_v24 = vld [vmem:[%s1319_s6 + $0x8] sm:$0xff]   ;;  %v962_v25 = vld [vmem:[%s1319_s6] sm:$0xff]   ;;  %v967_v59 = vld [vmem:[%s1325_s10 + $0x74] ss:$8 sps:$4 sm:$0xff]  }
   0x6   :  { %v782_v26 = vld [vmem:[%s1321_s5] ss:$0 sm:$0xff]  ;;  %s1019_s5 = smov 80   ;;  %v963_v50 = vld [vmem:[%s1324_s8 + $0x8] sm:$0xff]  }
   0x7   :  { %872 = vmatpush3.bf16.msra.mxu1 %v952_v5  ;;  %v791_v36 = vld [vmem:[%s1322_s7] ss:$0 sm:$0xff]  ;;  %v332_v53 = vld [vmem:[%s1323_s1 + $0x8] sm:$0xff] }
   0x8   :  { %v948_v1 = vld [vmem:[%s1335_s23 + $0x8] sm:$0xff]   ;;  %v949_v2 = vld [vmem:[%s1335_s23] sm:$0xff]   ;;  %873 = vmatprep.subr.bf16.mxu1 %v1017_v0 }
   0x9   :  { %862 = vmatpush3.bf16.msra.mxu0 %v948_v1  ;;  %v331_v49 = vld [vmem:[%s1323_s1] sm:$0xff] }
   0xa   :  { %863 = vmatprep.subr.bf16.mxu0 %v1017_v0  ;;  %v964_v57 = vld [vmem:[%s1324_s8] sm:$0xff]  }
   0xb   :  { %874 = vmatpush3.bf16.msra.mxu1 %v953_v6 }
   0xc   :  { %875 = vmatprep.subr.bf16.mxu1 %v1017_v0 }
   0xd   :  { %864 = vmatpush3.bf16.msra.mxu0 %v949_v2 }
   0xe   :  { %889 = vmatprep.subr.bf16.mxu0 %v1017_v0 }
   0xf   :  { %876 = vmatpush3.bf16.msra.mxu1 %v954_v7 }
  0x10   :  { %866 = vmatmul.mubr.msk.bf16.vlgmr.msra.gmra.mxu0 %vm84_vm1, %v950_v4  ;;  %877 = vmatprep.subr.bf16.mxu1 %v1017_v0 }
  0x11   :  { %897 = vmatprep.mubr.msk.bf16.mxu0 %vm1018_vm0, %v1017_v0  ;;  %890 = vmatpush3.bf16.msra.mxu0 %v959_v12  ;;  %v968_v12 = vld [vmem:[%s1325_s10 + $0x60] ss:$8 sps:$4 sm:$0xff]  }
  0x12   :  { %891 = vmatprep.subr.bf16.mxu0 %v1017_v0 }
  0x13   :  { %878 = vmatpush3.bf16.msra.mxu1 %v955_v8 }
  0x14   :  { %879 = vmatprep.subr.bf16.mxu1 %v1017_v0 }
  0x15   :  { %892 = vmatpush3.bf16.msra.mxu0 %v960_v23  ;;  %v988_v23 = vld [vmem:[%s1325_s10 + $0x4] ss:$8 sps:$4 sm:$0xff]  }
  0x16   :  { %893 = vmatprep.subr.bf16.mxu0 %v1017_v0 }
  0x17   :  { %880 = vmatpush3.bf16.msra.mxu1 %v956_v9  ;;  %v965_v9 = vld [vmem:[%s1325_s10 + $0x70] ss:$8 sps:$4 sm:$0xff]  }
  0x18   :  { %881 = vmatprep.subr.bf16.mxu1 %v1017_v0 }
  0x19   :  { %894 = vmatpush3.bf16.msra.mxu0 %v961_v24  ;;  %v986_v24 = vld [vmem:[%s1325_s10] ss:$8 sps:$4 sm:$0xff]  }
  0x1a   :  { %895 = vmatprep.subr.bf16.mxu0 %v1017_v0 }
  0x1b   :  { %882 = vmatpush3.bf16.msra.mxu1 %v957_v10 }
  0x1c   :  { %883 = vmatprep.subr.bf16.mxu1 %v1017_v0 }
  0x1d   :  { %896 = vmatpush3.bf16.msra.mxu0 %v962_v25  ;;  %v1023_v25 = vmov 0  }
  0x1e   :  { %901 = vmatprep.subr.bf16.mxu0 %v1017_v0  ;;  %946 = vset.pattern.permute.xlu0 %v1023_v25 }
  0x1f   :  { %884 = vmatpush3.bf16.msra.mxu1 %v958_v11  ;;  %v970_v11 = vld [vmem:[%s1325_s10 + $0x64] ss:$8 sps:$4 sm:$0xff]   ;;  %947 = vset.pattern.permute.xlu1 %v1023_v25 }
  0x20   :  { %909 = vmatprep.subr.bf16.mxu1 %v1017_v0 }
  0xd0   :  { %v122_v14 = vpop.f32.mrf.mxu0 }
  0xd1   :  { %v123_v16 = vadd.f32 %v777_v13, %v122_v14  ;;  %v971_v14 = vld [vmem:[%s1325_s10 + $0x50] ss:$8 sps:$4 sm:$0xff]  }
  0xd2   :  { %v867_v15 = vpop.f32.mrf.mxu0 }
  0xd3   :  { %v129_v20 = vmax.f32 %v123_v16, 0.0  ;;  %v976_v15 = vld [vmem:[%s1325_s10 + $0x44] ss:$8 sps:$4 sm:$0xff]   ;;  %v974_v16 = vld [vmem:[%s1325_s10 + $0x40] ss:$8 sps:$4 sm:$0xff]  }
  0xd4   :  { %v125_v17 = vpop.f32.mrf.mxu0 }
  0xd5   :  { %v126_v18 = vadd.f32 %v777_v13, %v125_v17  ;;  %v973_v13 = vld [vmem:[%s1325_s10 + $0x54] ss:$8 sps:$4 sm:$0xff]  }
  0xd6   :  { %v868_v19 = vpop.f32.mrf.mxu0  ;;  %v979_v17 = vld [vmem:[%s1325_s10 + $0x34] ss:$8 sps:$4 sm:$0xff]  }
  0xd7   :  { %v130_v21 = vmax.f32 %v126_v18, 0.0  ;;  %v977_v18 = vld [vmem:[%s1325_s10 + $0x30] ss:$8 sps:$4 sm:$0xff]   ;;  %v982_v19 = vld [vmem:[%s1325_s10 + $0x24] ss:$8 sps:$4 sm:$0xff]  }
  0xd9   :  { %v131_v22 = vpack.c.bf16 %v130_v21, %v129_v20  ;;  %v980_v20 = vld [vmem:[%s1325_s10 + $0x20] ss:$8 sps:$4 sm:$0xff]   ;;  %v985_v21 = vld [vmem:[%s1325_s10 + $0x14] ss:$8 sps:$4 sm:$0xff]  }
  0xdb   :  { %886 = vmatmul.mubr.bf16.vlgmr.msra.gmra.mxu1 %v131_v22  ;;  %v983_v22 = vld [vmem:[%s1325_s10 + $0x10] ss:$8 sps:$4 sm:$0xff]  }
  0xdc   :  { %925 = vmatprep.mubr.msk.bf16.mxu1 %vm1018_vm0, %v1017_v0 }
 0x19b   :  { %v237_v27 = vpop.f32.mrf.mxu1 }
 0x19c   :  { %v238_v29 = vadd.f32 %v782_v26, %v237_v27  ;;  %v990_v27 = vld [vmem:[%s1326_s12 + $0x30] sm:$0xff]  }
 0x19d   :  { %v887_v28 = vpop.f32.mrf.mxu1 }
 0x19e   :  { %v244_v33 = vmax.f32 %v238_v29, 0.0  ;;  %v991_v28 = vld [vmem:[%s1326_s12 + $0x28] sm:$0xff]   ;;  %v992_v29 = vld [vmem:[%s1326_s12 + $0x20] sm:$0xff]  }
 0x19f   :  { %v240_v30 = vpop.f32.mrf.mxu1 }
 0x1a0   :  { %v241_v31 = vadd.f32 %v782_v26, %v240_v30  ;;  %v989_v26 = vld [vmem:[%s1326_s12 + $0x38] sm:$0xff]  }
 0x1a1   :  { %v888_v32 = vpop.f32.mrf.mxu1  ;;  %910 = vmatpush3.bf16.msra.mxu1 %v989_v26  ;;  %v993_v30 = vld [vmem:[%s1326_s12 + $0x18] sm:$0xff]  }
 0x1a2   :  { %v245_v34 = vmax.f32 %v241_v31, 0.0  ;;  %911 = vmatprep.subr.bf16.mxu1 %v1017_v0  ;;  %v797_v31 = vld [vmem:[%s1327_s9] ss:$0 sm:$0xff] }
 0x1a4   :  { %v246_v35 = vpack.c.bf16 %v245_v34, %v244_v33 }
 0x1a5   :  { %912 = vmatpush3.bf16.msra.mxu1 %v990_v27 }
 0x1a6   :  { %898 = vmatmul.mubr.msk.bf16.vlgmr.msra.gmra.mxu0 %vm286_vm2, %v246_v35  ;;  %913 = vmatprep.subr.bf16.mxu1 %v1017_v0 }
 0x1a7   :  { %905 = vmatprep.mubr.msk.bf16.mxu0 %vm1018_vm0, %v1017_v0  ;;  %902 = vmatpush3.bf16.msra.mxu0 %v963_v50  ;;  %v465_v50 = vld [vmem:[%s1328_s11] sm:$0x3] }
 0x1a8   :  { %903 = vmatprep.subr.bf16.mxu0 %v1017_v0 }
 0x1a9   :  { %914 = vmatpush3.bf16.msra.mxu1 %v991_v28 }
 0x1aa   :  { %915 = vmatprep.subr.bf16.mxu1 %v1017_v0 }
 0x1ab   :  { %904 = vmatpush3.bf16.msra.mxu0 %v964_v57 }
 0x1ac   :  { %557 = vmatprep.subr.bf16.mxu0 %v967_v59 }
 0x1ad   :  { %916 = vmatpush3.bf16.msra.mxu1 %v992_v29 }
 0x1ae   :  { %917 = vmatprep.subr.bf16.mxu1 %v1017_v0 }
 0x1b1   :  { %918 = vmatpush3.bf16.msra.mxu1 %v993_v30 }
 0x1b2   :  { %919 = vmatprep.subr.bf16.mxu1 %v1017_v0 }
 0x266   :  { %v324_v37 = vpop.f32.mrf.mxu0 }
 0x267   :  { %v1190_v38 = vadd.f32 %v791_v36, %v324_v37 }
 0x268   :  { %v899_v39 = vpop.f32.mrf.mxu0 }
 0x269   :  { %v333_v40 = vmul.f32 0.5, %v1190_v38 }
 0x26a   :  { %v327_v41 = vpop.f32.mrf.mxu0 }
 0x26b   :  { %v335_v42 = vmul.f32 1.442695, %v333_v40  ;;  %v1193_v43 = vadd.f32 %v791_v36, %v327_v41 }
 0x26c   :  { %v900_v44 = vpop.f32.mrf.mxu0 }
 0x26d   :  { %997 = vpow2.f32 %v335_v42  ;;  %v334_v45 = vmul.f32 0.5, %v1193_v43  ;;  %v941_v56 = vpack.i.bf16 %v1193_v43, %v1190_v38  ;;  %v994_v42 = vld [vmem:[%s1326_s12 + $0x10] sm:$0xff]   ;;  %v995_v44 = vld [vmem:[%s1326_s12 + $0x8] sm:$0xff]  }
 0x26e   :  { %920 = vmatpush3.bf16.msra.mxu1 %v994_v42 }
 0x26f   :  { %v337_v46 = vmul.f32 1.442695, %v334_v45  ;;  %921 = vmatprep.subr.bf16.mxu1 %v1017_v0  ;;  %v996_v45 = vld [vmem:[%s1326_s12] sm:$0xff]  }
 0x271   :  { %999 = vpow2.f32 %v337_v46  ;;  %v467_v46 = vlaneseq }
 0x272   :  { %922 = vmatpush3.bf16.msra.mxu1 %v995_v44 }
 0x273   :  { %923 = vmatprep.subr.bf16.mxu1 %v1017_v0 }
 0x276   :  { %924 = vmatpush3.bf16.msra.mxu1 %v996_v45 }
 0x27a   :  { %v998_v47 = vpop.eup %997 }
 0x27b   :  { %341 = vrot.lane.b32.xlu0 %v998_v47, %s1019_s5  ;;  %v468_v47 = vshrl.u32 %v467_v46, 7 }
 0x27e   :  { %v1000_v48 = vpop.eup %999 }
 0x27f   :  { %343 = vrot.lane.b32.xlu0 %v1000_v48, %s1019_s5  ;;  %v469_v48 = vsub.s32 0, %v468_v47 }
 0x2ed   :  { %v342_v51 = vpop.permute.xlu0 %341 }
 0x2ee   :  { %v347_v52 = vmul.f32 %v342_v51, %v331_v49  ;;  %v473_v49 = vsub.s32 1, %v468_v47  ;;  %v470_v51 = vrot.slane %v465_v50, %v469_v48 }
 0x2f0   :  { %351 = vrot.lane.b32.xlu1 %v347_v52, %s1020_s28  ;;  %v474_v52 = vrot.slane %v465_v50, %v473_v49 }
 0x2f1   :  { %v344_v54 = vpop.permute.xlu0 %343 }
 0x2f2   :  { %v348_v55 = vmul.f32 %v344_v54, %v332_v53 }
 0x2f4   :  { %353 = vrot.lane.b32.xlu1 %v348_v55, %s1020_s28 }
 0x2f8   :  { %942 = vrot.lane.b32.xlu1 %v941_v56, %s1021_s29 }
 0x362   :  { %v352_v58 = vpop.permute.xlu1 %351 }
 0x363   :  { %v357_v61 = vadd.f32 %v352_v58, %v1190_v38 }
 0x366   :  { %v354_v60 = vpop.permute.xlu1 %353 }
 0x367   :  { %v358_v62 = vadd.f32 %v354_v60, %v1193_v43 }
 0x369   :  { %v936_v63 = vpack.i.bf16 %v358_v62, %v357_v61 }
 0x36a   :  { %v943_v1 = vpop.permute.xlu1 %942 }
 0x36b   :  { %937 = vrot.lane.b32.xlu0 %v936_v63, %s1022_s17  ;;  %v945_v3 = vunpack.i.h.bf16 %v943_v1  ;;  %v944_v4 = vunpack.i.l.bf16 %v943_v1 }
 0x3dd   :  { %v938_v2 = vpop.permute.xlu0 %937 }
 0x3de   :  { %v940_v5 = vunpack.i.h.bf16 %v938_v2  ;;  %v939_v6 = vunpack.i.l.bf16 %v938_v2 }
 0x3e0   :  { %v376_v7 = vsel %vm375_vm3, %v939_v6, %v944_v4  ;;  %v377_v8 = vsel %vm375_vm3, %v940_v5, %v945_v3 }
 0x3e1   :  { %v378_v10 = vpack.c.bf16 %v377_v8, %v376_v7  ;;  %v819_v8 = vld [vmem:[%s1329_s13] ss:$0 sm:$0xff] }
 0x3e3   :  { %906 = vmatmul.mubr.msk.bf16.vlgmr.msra.gmra.mxu0 %vm84_vm1, %v378_v10 }
 0x3e4   :  { %558 = vmatpush1.bf16.msra.mxu0 %v965_v9  ;;  %589 = vmatprep.mubr.bf16.mxu0 %v1023_v25 }
 0x3e5   :  { %559 = vmatprep.subr.bf16.mxu0 %v970_v11 }
 0x3e8   :  { %560 = vmatpush1.bf16.msra.mxu0 %v968_v12 }
 0x3e9   :  { %561 = vmatprep.subr.bf16.mxu0 %v973_v13 }
 0x3ec   :  { %562 = vmatpush1.bf16.msra.mxu0 %v971_v14 }
 0x3ed   :  { %563 = vmatprep.subr.bf16.mxu0 %v976_v15 }
 0x3f0   :  { %564 = vmatpush1.bf16.msra.mxu0 %v974_v16 }
 0x3f1   :  { %565 = vmatprep.subr.bf16.mxu0 %v979_v17 }
 0x3f4   :  { %566 = vmatpush1.bf16.msra.mxu0 %v977_v18 }
 0x3f5   :  { %567 = vmatprep.subr.bf16.mxu0 %v982_v19 }
 0x3f8   :  { %568 = vmatpush1.bf16.msra.mxu0 %v980_v20 }
 0x3f9   :  { %569 = vmatprep.subr.bf16.mxu0 %v985_v21  ;;  %v830_v21 = vld [vmem:[%s1330_s14] ss:$0 sm:$0xff] }
 0x3fc   :  { %570 = vmatpush1.bf16.msra.mxu0 %v983_v22 }
 0x3fd   :  { %571 = vmatprep.subr.bf16.mxu0 %v988_v23  ;;  %v831_v23 = vld [vmem:[%s1331_s15] ss:$0 sm:$0xff] }
 0x400   :  { %572 = vmatpush1.bf16.msra.mxu0 %v986_v24 }
 0x4a3   :  { %v439_v32 = vpop.f32.mrf.mxu0 }
 0x4a4   :  { %v440_v34 = vadd.f32 %v797_v31, %v439_v32 }
 0x4a5   :  { %v907_v33 = vpop.f32.mrf.mxu0 }
 0x4a6   :  { %v446_v39 = vmax.f32 %v440_v34, 0.0 }
 0x4a7   :  { %v442_v35 = vpop.f32.mrf.mxu0 }
 0x4a8   :  { %v443_v36 = vadd.f32 %v797_v31, %v442_v35 }
 0x4a9   :  { %v908_v37 = vpop.f32.mrf.mxu0 }
 0x4aa   :  { %v447_v40 = vmax.f32 %v443_v36, 0.0 }
 0x4ac   :  { %v448_v41 = vpack.c.bf16 %v447_v40, %v446_v39 }
 0x4ae   :  { %590 = vmatmul.mubr.bf16.vlgmr.msra.gmra.mxu0 %v448_v41 }
 0x56e   :  { %v591_v53 = vpop.f32.mrf.mxu0 }
 0x56f   :  { %v592_v55 = vadd.f32 %v591_v53, %v470_v51 }
 0x570   :  { %v593_v54 = vpop.f32.mrf.mxu0 }
 0x571   :  { %v594_v56 = vadd.f32 %v593_v54, %v474_v52  ;;  %v600_v60 = vmax.f32 %v592_v55, 0.0 }
 0x572   :  { %v595_v0 = vpop.f32.mrf.mxu0 }
 0x573   :  { %v817_v57 = vmul.f32 -1.442695, %v594_v56  ;;  %v596_v58 = vadd.f32 %v595_v0, %v470_v51 }
 0x574   :  { %v597_v59 = vpop.f32.mrf.mxu0 }
 0x575   :  { %1001 = vpow2.f32 %v817_v57  ;;  %v601_v61 = vmax.f32 %v596_v58, 0.0  ;;  %v598_v62 = vadd.f32 %v597_v59, %v474_v52 }
 0x577   :  { %v614_v63 = vpack.c.bf16 %v601_v61, %v600_v60  ;;  %v818_v1 = vmul.f32 -1.442695, %v598_v62 }
 0x579   :  { %1003 = vpow2.f32 %v818_v1  ;;  %926 = vmatmul.mubr.bf16.vlgmr.msra.gmra.mxu1 %v614_v63 }
 0x582   :  { %v1002_v2 = vpop.eup %1001 }
 0x583   :  { %v608_v3 = vadd.f32 1.0, %v1002_v2 }
 0x585   :  { %1005 = vrcp.f32 %v608_v3 }
 0x586   :  { %v1004_v4 = vpop.eup %1003 }
 0x587   :  { %v609_v5 = vadd.f32 1.0, %v1004_v4 }
 0x589   :  { %1007 = vrcp.f32 %v609_v5 }
 0x592   :  { %v1006_v6 = vpop.eup %1005 }
 0x593   :  { %753 = vperm.xlu0 %946, %v1006_v6  }
 0x596   :  { %v1008_v7 = vpop.eup %1007 }
 0x597   :  { %758 = vperm.xlu1 %947, %v1008_v7  }
 0x60e   :  { %v754_v24 = vpop.permute.xlu0 %753 }
 0x60f   :  { %v767_v26 = vmul.f32 %v831_v23, %v754_v24 }
 0x612   :  { %v759_v29 = vpop.permute.xlu1 %758 }
 0x613   :  { %v768_v32 = vmul.f32 %v831_v23, %v759_v29 }
 0x639   :  { %v720_v9 = vpop.f32.mrf.mxu1 }
 0x63a   :  { %v721_v10 = vadd.f32 %v819_v8, %v720_v9 }
 0x63b   :  { %v927_v11 = vpop.f32.mrf.mxu1 }
 0x63c   :  { %v828_v12 = vmul.f32 -1.442695, %v721_v10 }
 0x63d   :  { %v723_v13 = vpop.f32.mrf.mxu1 }
 0x63e   :  { %1009 = vpow2.f32 %v828_v12  ;;  %v724_v14 = vadd.f32 %v819_v8, %v723_v13 }
 0x63f   :  { %v928_v15 = vpop.f32.mrf.mxu1 }
 0x640   :  { %v829_v16 = vmul.f32 -1.442695, %v724_v14 }
 0x642   :  { %1011 = vpow2.f32 %v829_v16 }
 0x64b   :  { %v1010_v17 = vpop.eup %1009 }
 0x64c   :  { %v733_v18 = vadd.f32 1.0, %v1010_v17 }
 0x64e   :  { %1013 = vrcp.f32 %v733_v18 }
 0x64f   :  { %v1012_v19 = vpop.eup %1011 }
 0x650   :  { %v734_v20 = vadd.f32 1.0, %v1012_v19 }
 0x652   :  { %1015 = vrcp.f32 %v734_v20 }
 0x65b   :  { %v1014_v22 = vpop.eup %1013 }
 0x65c   :  { %v746_v25 = vmul.f32 %v1014_v22, %v830_v21 }
 0x65e   :  { %v748_v27 = vadd.f32 %v746_v25, %v1190_v38 }
 0x65f   :  { %v1016_v28 = vpop.eup %1015 }
 0x660   :  { %v769_v30 = vadd.f32 %v767_v26, %v748_v27  ;;  %v747_v31 = vmul.f32 %v1016_v28, %v830_v21 }
 0x662   :  { %771 = vst [vmem:[%s1332_s16] sm:$0xff] %v769_v30  ;;  %v749_v33 = vadd.f32 %v747_v31, %v1193_v43 }
 0x664   :  { %v770_v34 = vadd.f32 %v768_v32, %v749_v33 }
 0x666   :  { %772 = vst [vmem:[%s1332_s16 + $0x8] sm:$0xff] %v770_v34 }

</bundles_post_ra>
